<compile_context>
chip_gen: v6e
topology: v6e:2x2x1
jax: 0.10.0
libtpu: 0.0.40
codegen_flags: <defaults>
</compile_context>

<pallas_src>
import jax
import jax.numpy as jnp
from jax import lax
from jax.experimental import pallas as pl
from jax.experimental.pallas import tpu as pltpu


def make_head_kernel(Cin, Cout, H, W):
    HW = H * W

    def head_kernel(x_ref, w1_ref, b1_ref, w2_ref, b2_ref, o_ref):
        # x_ref : (Cin, H*W)      one batch element, NCHW flattened spatially
        # w1_ref: (Cin, 9*Cin)    conv1 weights, K index = (ky*3+kx)*Cin + c
        # b1_ref: (Cin, 1)
        # w2_ref: (Cout, Cin)     1x1 conv weights
        # b2_ref: (Cout, 1)
        # o_ref : (Cout, H*W)     lane-dense output
        x = x_ref[...]                                        # (Cin, HW)

        # Zero halo along the flattened spatial (lane) axis: a shift of
        # dy*W + dx indexes the (y+dy, x+dx) neighbour; out-of-image rows fall
        # into the zero pads, out-of-image columns are masked below.
        zpad = jnp.zeros((Cin, W + 1), x.dtype)
        xp = jnp.concatenate([zpad, x, zpad], axis=1)         # (Cin, HW + 2W + 2)

        col = lax.broadcasted_iota(jnp.int32, (1, HW), 1) % W
        not_left = col != 0                                   # valid for dx = -1 taps
        not_right = col != (W - 1)                            # valid for dx = +1 taps

        # Build im2col (9*Cin, HW) from 9 statically shifted slabs, then a
        # single accumulated MXU matmul for conv1.
        slabs = []
        for ky in range(3):
            for kx in range(3):
                dy, dx = ky - 1, kx - 1
                off = (W + 1) + dy * W + dx                   # static slice start
                slab = xp[:, off:off + HW]                    # (Cin, HW)
                if dx == -1:
                    slab = jnp.where(not_left, slab, 0.0)
                elif dx == 1:
                    slab = jnp.where(not_right, slab, 0.0)
                slabs.append(slab)
        im2col = jnp.concatenate(slabs, axis=0)               # (9*Cin, HW)

        # conv1 (3x3, padding=1) + bias + ReLU
        h = jnp.dot(w1_ref[...], im2col,
                    preferred_element_type=jnp.float32)       # (Cin, HW)
        h = jnp.maximum(h + b1_ref[...], 0.0)

        # conv2 (1x1) + bias
        out = jnp.dot(w2_ref[...], h,
                      preferred_element_type=jnp.float32)     # (Cout, HW)
        out = out + b2_ref[...]

        o_ref[...] = out.astype(o_ref.dtype)

    return head_kernel


def head_forward(x_nchw, w1, b1, w2, b2):
    """x_nchw: (N, Cin, H, W) float32.  Returns (N, Cout, H, W)."""
    N, Cin, H, W = x_nchw.shape
    Cout = w2.shape[0]
    HW = H * W

    # Glue is reshape-only (contiguous => free): no XLA pad, no transposes.
    x_flat = x_nchw.reshape(N, Cin, HW)                       # (N, Cin, HW)
    w1_k = jnp.transpose(w1, (0, 2, 3, 1)).reshape(Cin, 9 * Cin)  # (Cin, 9*Cin)
    b1_k = b1.reshape(Cin, 1)
    w2_k = w2.reshape(Cout, Cin)                              # (Cout, Cin)
    b2_k = b2.reshape(Cout, 1)

    out_flat = pl.pallas_call(
        make_head_kernel(Cin, Cout, H, W),
        out_shape=jax.ShapeDtypeStruct((N, Cout, HW), x_nchw.dtype),
        grid_spec=pltpu.PrefetchScalarGridSpec(
            num_scalar_prefetch=0,
            grid=(N,),  # batch axis: parallel (feeds both TCs on v7x)
            in_specs=[
                pl.BlockSpec((pl.Squeezed(), Cin, HW), lambda n: (n, 0, 0)),
                pl.BlockSpec((Cin, 9 * Cin), lambda n: (0, 0)),
                pl.BlockSpec((Cin, 1), lambda n: (0, 0)),
                pl.BlockSpec((Cout, Cin), lambda n: (0, 0)),
                pl.BlockSpec((Cout, 1), lambda n: (0, 0)),
            ],
            out_specs=pl.BlockSpec((pl.Squeezed(), Cout, HW), lambda n: (n, 0, 0)),
        ),
        compiler_params=pltpu.CompilerParams(
            dimension_semantics=("parallel",)),
        # Note: for large spatial dims, add an H-tiled grid axis with a 1-row
        # halo to stay under v7x's 64 MiB VMEM; unnecessary at 16x16.
    )(x_flat, w1_k, b1_k, w2_k, b2_k)

    return out_flat.reshape(N, Cout, H, W)


def reference_forward(x_nchw, w1, b1, w2, b2):
    """Pure-JAX reference matching PyTorch semantics (NCHW conv)."""
    dn = lax.conv_dimension_numbers(x_nchw.shape, w1.shape, ("NCHW", "OIHW", "NCHW"))
    y = lax.conv_general_dilated(x_nchw, w1, (1, 1), ((1, 1), (1, 1)),
                                 dimension_numbers=dn)
    y = y + b1.reshape(1, -1, 1, 1)
    y = jnp.maximum(y, 0.0)
    dn2 = lax.conv_dimension_numbers(y.shape, w2.shape, ("NCHW", "OIHW", "NCHW"))
    z = lax.conv_general_dilated(y, w2, (1, 1), ((0, 0), (0, 0)),
                                 dimension_numbers=dn2)
    z = z + b2.reshape(1, -1, 1, 1)
    return z


if __name__ == "__main__":
    # Small shapes consistent with the module: batch=2, in_channel=4, spatial=16,
    # out_channel=8, bias_fill=True with bias_value=0.1.
    N, Cin, H, W, Cout = 2, 4, 16, 16, 8
    bias_value = 0.1

    key = jax.random.PRNGKey(0)
    kx, kw1, kb1, kw2 = jax.random.split(key, 4)

    x = jax.random.normal(kx, (N, Cin, H, W), jnp.float32)

    # Deterministic parameter init (shapes per nn.Conv2d in __init__).
    w1 = jax.random.normal(kw1, (Cin, Cin, 3, 3), jnp.float32) * 0.1   # conv1 weight (OIHW)
    b1 = jax.random.normal(kb1, (Cin,), jnp.float32) * 0.1             # conv1 bias
    w2 = jax.random.normal(kw2, (Cout, Cin, 1, 1), jnp.float32) * 0.1  # conv2 weight (OIHW)
    b2 = jnp.full((Cout,), bias_value, jnp.float32)                    # conv2 bias (bias_fill)

    out = jax.block_until_ready(head_forward(x, w1, b1, w2, b2))
    ref = jax.block_until_ready(reference_forward(x, w1, b1, w2, b2))

    assert out.shape == (N, Cout, H, W)
    assert jnp.allclose(out, ref, atol=1e-5, rtol=1e-5)
    print("KERNEL_OK")
</pallas_src>

<mosaic_0001>
module attributes {stable_mosaic.version = 11 : i64} {
  func.func @head_kernel(%arg0: i32, %arg1: memref<1x4x256xf32, #tpu.memory_space<vmem>>, %arg2: memref<4x36xf32, #tpu.memory_space<vmem>>, %arg3: memref<4x1xf32, #tpu.memory_space<vmem>>, %arg4: memref<8x4xf32, #tpu.memory_space<vmem>>, %arg5: memref<8x1xf32, #tpu.memory_space<vmem>>, %arg6: memref<1x8x256xf32, #tpu.memory_space<vmem>>) attributes {dimension_semantics = [#tpu.dimension_semantics<parallel>], iteration_bounds = array<i64: 2>, scalar_prefetch = 0 : i64, scratch_operands = 0 : i64, tpu.core_type = #tpu.core_type<tc>, window_params = [{transform_indices = @transform_0, window_bounds = array<i64: 1, 4, 256>}, {pipeline_mode = #tpu.pipeline_mode<synchronous>, transform_indices = @transform_1, window_bounds = array<i64: 4, 36>}, {pipeline_mode = #tpu.pipeline_mode<synchronous>, transform_indices = @transform_2, window_bounds = array<i64: 4, 1>}, {pipeline_mode = #tpu.pipeline_mode<synchronous>, transform_indices = @transform_3, window_bounds = array<i64: 8, 4>}, {pipeline_mode = #tpu.pipeline_mode<synchronous>, transform_indices = @transform_4, window_bounds = array<i64: 8, 1>}, {transform_indices = @transform_5, window_bounds = array<i64: 1, 8, 256>}]} {
    %c0 = arith.constant 0 : index
    %c0_0 = arith.constant 0 : index
    %c0_1 = arith.constant 0 : index
    %0 = vector.load %arg1[%c0, %c0_0, %c0_1] : memref<1x4x256xf32, #tpu.memory_space<vmem>>, vector<1x4x256xf32>
    %1 = vector.shape_cast %0 : vector<1x4x256xf32> to vector<4x256xf32>
    %cst = arith.constant 0.000000e+00 : f32
    %2 = vector.broadcast %cst : f32 to vector<4x17xf32>
    %3 = tpu.concatenate %2, %1, %2 in 1 : vector<4x17xf32>, vector<4x256xf32>, vector<4x17xf32> -> vector<4x290xf32>
    %4 = tpu.iota {dimensions = array<i32: 1>} : vector<1x256xi32>
    %c16_i32 = arith.constant 16 : i32
    %c0_i32 = arith.constant 0 : i32
    %5 = arith.cmpi eq, %c16_i32, %c0_i32 : i32
    %c1_i32 = arith.constant 1 : i32
    %6 = arith.select %5, %c1_i32, %c16_i32 : i32
    %7 = vector.broadcast %6 : i32 to vector<1x256xi32>
    %8 = arith.remsi %4, %7 : vector<1x256xi32>
    %c0_i32_2 = arith.constant 0 : i32
    %9 = vector.broadcast %c0_i32_2 : i32 to vector<1x256xi32>
    %10 = arith.cmpi ne, %8, %9 : vector<1x256xi32>
    %c0_i32_3 = arith.constant 0 : i32
    %11 = vector.broadcast %c0_i32_3 : i32 to vector<1x256xi32>
    %12 = arith.cmpi slt, %8, %11 : vector<1x256xi32>
    %c0_i32_4 = arith.constant 0 : i32
    %13 = arith.cmpi slt, %6, %c0_i32_4 : i32
    %14 = vector.broadcast %13 : i1 to vector<1x256xi1>
    %15 = vector.broadcast %14 : vector<1x256xi1> to vector<1x256xi1>
    %16 = arith.xori %12, %15 : vector<1x256xi1>
    %17 = arith.andi %16, %10 : vector<1x256xi1>
    %18 = vector.broadcast %6 : i32 to vector<1x256xi32>
    %19 = arith.addi %8, %18 : vector<1x256xi32>
    %20 = arith.select %17, %19, %8 : vector<1x256xi1>, vector<1x256xi32>
    %c0_i32_5 = arith.constant 0 : i32
    %21 = vector.broadcast %c0_i32_5 : i32 to vector<1x256xi32>
    %22 = arith.cmpi ne, %20, %21 : vector<1x256xi32>
    %c15_i32 = arith.constant 15 : i32
    %23 = vector.broadcast %c15_i32 : i32 to vector<1x256xi32>
    %24 = arith.cmpi ne, %20, %23 : vector<1x256xi32>
    %25 = vector.extract_strided_slice %3 {offsets = [0, 0], sizes = [4, 256], strides = [1, 1]} : vector<4x290xf32> to vector<4x256xf32>
    %cst_6 = arith.constant 0.000000e+00 : f32
    %26 = vector.shape_cast %22 : vector<1x256xi1> to vector<1x256xi1>
    %27 = vector.broadcast %26 : vector<1x256xi1> to vector<4x256xi1>
    %28 = vector.broadcast %cst_6 : f32 to vector<4x256xf32>
    %29 = arith.select %27, %25, %28 : vector<4x256xi1>, vector<4x256xf32>
    %30 = vector.extract_strided_slice %3 {offsets = [0, 1], sizes = [4, 256], strides = [1, 1]} : vector<4x290xf32> to vector<4x256xf32>
    %31 = vector.extract_strided_slice %3 {offsets = [0, 2], sizes = [4, 256], strides = [1, 1]} : vector<4x290xf32> to vector<4x256xf32>
    %cst_7 = arith.constant 0.000000e+00 : f32
    %32 = vector.shape_cast %24 : vector<1x256xi1> to vector<1x256xi1>
    %33 = vector.broadcast %32 : vector<1x256xi1> to vector<4x256xi1>
    %34 = vector.broadcast %cst_7 : f32 to vector<4x256xf32>
    %35 = arith.select %33, %31, %34 : vector<4x256xi1>, vector<4x256xf32>
    %36 = vector.extract_strided_slice %3 {offsets = [0, 16], sizes = [4, 256], strides = [1, 1]} : vector<4x290xf32> to vector<4x256xf32>
    %cst_8 = arith.constant 0.000000e+00 : f32
    %37 = vector.shape_cast %22 : vector<1x256xi1> to vector<1x256xi1>
    %38 = vector.broadcast %37 : vector<1x256xi1> to vector<4x256xi1>
    %39 = vector.broadcast %cst_8 : f32 to vector<4x256xf32>
    %40 = arith.select %38, %36, %39 : vector<4x256xi1>, vector<4x256xf32>
    %41 = vector.extract_strided_slice %3 {offsets = [0, 17], sizes = [4, 256], strides = [1, 1]} : vector<4x290xf32> to vector<4x256xf32>
    %42 = vector.extract_strided_slice %3 {offsets = [0, 18], sizes = [4, 256], strides = [1, 1]} : vector<4x290xf32> to vector<4x256xf32>
    %cst_9 = arith.constant 0.000000e+00 : f32
    %43 = vector.shape_cast %24 : vector<1x256xi1> to vector<1x256xi1>
    %44 = vector.broadcast %43 : vector<1x256xi1> to vector<4x256xi1>
    %45 = vector.broadcast %cst_9 : f32 to vector<4x256xf32>
    %46 = arith.select %44, %42, %45 : vector<4x256xi1>, vector<4x256xf32>
    %47 = vector.extract_strided_slice %3 {offsets = [0, 32], sizes = [4, 256], strides = [1, 1]} : vector<4x290xf32> to vector<4x256xf32>
    %cst_10 = arith.constant 0.000000e+00 : f32
    %48 = vector.shape_cast %22 : vector<1x256xi1> to vector<1x256xi1>
    %49 = vector.broadcast %48 : vector<1x256xi1> to vector<4x256xi1>
    %50 = vector.broadcast %cst_10 : f32 to vector<4x256xf32>
    %51 = arith.select %49, %47, %50 : vector<4x256xi1>, vector<4x256xf32>
    %52 = vector.extract_strided_slice %3 {offsets = [0, 33], sizes = [4, 256], strides = [1, 1]} : vector<4x290xf32> to vector<4x256xf32>
    %53 = vector.extract_strided_slice %3 {offsets = [0, 34], sizes = [4, 256], strides = [1, 1]} : vector<4x290xf32> to vector<4x256xf32>
    %cst_11 = arith.constant 0.000000e+00 : f32
    %54 = vector.shape_cast %24 : vector<1x256xi1> to vector<1x256xi1>
    %55 = vector.broadcast %54 : vector<1x256xi1> to vector<4x256xi1>
    %56 = vector.broadcast %cst_11 : f32 to vector<4x256xf32>
    %57 = arith.select %55, %53, %56 : vector<4x256xi1>, vector<4x256xf32>
    %58 = tpu.concatenate %29, %30, %35, %40, %41, %46, %51, %52, %57 in 0 : vector<4x256xf32>, vector<4x256xf32>, vector<4x256xf32>, vector<4x256xf32>, vector<4x256xf32>, vector<4x256xf32>, vector<4x256xf32>, vector<4x256xf32>, vector<4x256xf32> -> vector<36x256xf32>
    %c0_12 = arith.constant 0 : index
    %c0_13 = arith.constant 0 : index
    %59 = vector.load %arg2[%c0_12, %c0_13] : memref<4x36xf32, #tpu.memory_space<vmem>>, vector<4x36xf32>
    %cst_14 = arith.constant dense<0.000000e+00> : vector<4x256xf32>
    %60 = tpu.matmul %59, %58, %cst_14 {dimension_numbers = #tpu.dot_dimension_numbers<[1], [0], [0], [1], [0, 0, 1, 1], [], []>} : vector<4x36xf32>, vector<36x256xf32>, vector<4x256xf32> -> vector<4x256xf32>
    %c0_15 = arith.constant 0 : index
    %c0_16 = arith.constant 0 : index
    %61 = vector.load %arg3[%c0_15, %c0_16] : memref<4x1xf32, #tpu.memory_space<vmem>>, vector<4x1xf32>
    %62 = vector.broadcast %61 : vector<4x1xf32> to vector<4x256xf32>
    %63 = arith.addf %60, %62 : vector<4x256xf32>
    %cst_17 = arith.constant 0.000000e+00 : f32
    %64 = vector.broadcast %cst_17 : f32 to vector<4x256xf32>
    %65 = arith.maximumf %63, %64 : vector<4x256xf32>
    %c0_18 = arith.constant 0 : index
    %c0_19 = arith.constant 0 : index
    %66 = vector.load %arg4[%c0_18, %c0_19] : memref<8x4xf32, #tpu.memory_space<vmem>>, vector<8x4xf32>
    %cst_20 = arith.constant dense<0.000000e+00> : vector<8x256xf32>
    %67 = tpu.matmul %66, %65, %cst_20 {dimension_numbers = #tpu.dot_dimension_numbers<[1], [0], [0], [1], [0, 0, 1, 1], [], []>} : vector<8x4xf32>, vector<4x256xf32>, vector<8x256xf32> -> vector<8x256xf32>
    %c0_21 = arith.constant 0 : index
    %c0_22 = arith.constant 0 : index
    %68 = vector.load %arg5[%c0_21, %c0_22] : memref<8x1xf32, #tpu.memory_space<vmem>>, vector<8x1xf32>
    %69 = vector.broadcast %68 : vector<8x1xf32> to vector<8x256xf32>
    %70 = arith.addf %67, %69 : vector<8x256xf32>
    %c0_23 = arith.constant 0 : index
    %c0_24 = arith.constant 0 : index
    %c0_25 = arith.constant 0 : index
    %71 = vector.load %arg6[%c0_23, %c0_24, %c0_25] : memref<1x8x256xf32, #tpu.memory_space<vmem>>, vector<1x8x256xf32>
    %72 = vector.shape_cast %71 : vector<1x8x256xf32> to vector<8x256xf32>
    %73 = vector.shape_cast %70 : vector<8x256xf32> to vector<1x8x256xf32>
    tpu.vector_store %arg6[%c0_23, %c0_24, %c0_25], %73 {strides = array<i32>} : memref<1x8x256xf32, #tpu.memory_space<vmem>>, vector<1x8x256xf32>,
    return
  }
  func.func @transform_0(%arg0: i32) -> (i32, i32, i32) {
    %c0_i32 = arith.constant 0 : i32
    %c0_i32_0 = arith.constant 0 : i32
    %c0_i32_1 = arith.constant 0 : i32
    return %arg0, %c0_i32, %c0_i32_0 : i32, i32, i32
  }
  func.func @transform_1(%arg0: i32) -> (i32, i32) {
    %c0_i32 = arith.constant 0 : i32
    %c0_i32_0 = arith.constant 0 : i32
    %c0_i32_1 = arith.constant 0 : i32
    return %c0_i32, %c0_i32_0 : i32, i32
  }
  func.func @transform_2(%arg0: i32) -> (i32, i32) {
    %c0_i32 = arith.constant 0 : i32
    %c0_i32_0 = arith.constant 0 : i32
    %c0_i32_1 = arith.constant 0 : i32
    return %c0_i32, %c0_i32_0 : i32, i32
  }
  func.func @transform_3(%arg0: i32) -> (i32, i32) {
    %c0_i32 = arith.constant 0 : i32
    %c0_i32_0 = arith.constant 0 : i32
    %c0_i32_1 = arith.constant 0 : i32
    return %c0_i32, %c0_i32_0 : i32, i32
  }
  func.func @transform_4(%arg0: i32) -> (i32, i32) {
    %c0_i32 = arith.constant 0 : i32
    %c0_i32_0 = arith.constant 0 : i32
    %c0_i32_1 = arith.constant 0 : i32
    return %c0_i32, %c0_i32_0 : i32, i32
  }
  func.func @transform_5(%arg0: i32) -> (i32, i32, i32) {
    %c0_i32 = arith.constant 0 : i32
    %c0_i32_0 = arith.constant 0 : i32
    %c0_i32_1 = arith.constant 0 : i32
    return %arg0, %c0_i32, %c0_i32_0 : i32, i32, i32
  }
}

</mosaic_0001>

<bundles_post_ra>
// kernel: tpu_custom_call.1
= control target key start
LH: loop header
LB: loop body
LE: loop exit
PB: predicated region body
PF: predicated region fallthrough
CT: control target
= control target key end

     0   :  { %10 = vsyncpa [#allocation3], 0  ;;  %s1013_s0 = inlined_call_operand.vmem [shape: f32[2,4,256], index: 0, kind: input, shape index: {}]   ;;  %s1014_s1 = inlined_call_operand.vmem [shape: f32[4,36], index: 1, kind: input, shape index: {}]   ;;  %s1015_s2 = inlined_call_operand.vmem [shape: f32[4,1], index: 2, kind: input, shape index: {}]   ;;  %s1016_s3 = inlined_call_operand.vmem [shape: f32[8,4], index: 3, kind: input, shape index: {}]   ;;  %s1017_s4 = inlined_call_operand.vmem [shape: f32[8,1], index: 4, kind: input, shape index: {}]   ;;  %s1018_s5 = inlined_call_operand.hbm [shape: f32[2,8,256], index: 5, kind: output, shape index: {}]  }
   0x1   :  { %12 = vsyncpa [#allocation3 + $0x1], 0  ;;  %s833_s18 = smov 0   ;;  %s835_s19 = smov 0  }
   0x2   :  { %s837_s20 = smov 0   ;;  %s839_s21 = smov 0  }
   0x3 LB: > { %s854_s22 = sadd.s32 4294967295, %s789_s21   ;;  %s656_s23 = sadd.s32 4294967294, %s789_s21   ;;  %s789_s21 = sphi %s839_s21, %s1032_s21   ;;  %s785_s20 = sphi %s837_s20, %s1031_s20   ;;  %s781_s19 = sphi %s835_s19, %s1030_s19   ;;  %s777_s18 = sphi %s833_s18, %s1029_s18  }
   0x4   : > { %s858_s24 = sadd.s32 1, %s789_s21   ;;  %s135_s25 = sadd.s32 1, %s785_s20 }
   0x5   : > { %s132_s26 = ssub.s32 %s789_s21, %s858_s24  ;;  %p145_p0 = scmp.ne.s32.totalorder %s785_s20, %s781_s19 }
   0x6   : > { %p133_p1 = scmp.eq.s32.totalorder %s132_s26, 0  ;;  %p146_p2 = scmp.eq.s32.totalorder %s854_s22, 1 }
   0x7   : > { %p151_p3 = scmp.ne.s32.totalorder %s781_s19, %s777_s18  ;;  %p152_p4 = scmp.eq.s32.totalorder %s656_s23, 1 }
   0x8   : > { %s869_s27 = scalar_select %p133_p1, %s785_s20, %s135_s25  }
   0x9   : > { %p871_p5 = por %p146_p2, %p145_p0  ;;  %p875_p6 = por %p152_p4, %p151_p3 }
   0xa   : > { %p659_p7 = scmp.ge.s32.totalorder %s789_s21, 1  ;;  %p190_p8 = scmp.lt.s32.totalorder %s789_s21, 3 }
   0xc   : > { %p191_p9 = pnand %p659_p7, %p190_p8 }
   0xd   : > { %p218_p10 = scmp.lt.s32.totalorder (!%p191_p9), %s854_s22, 1  ;;  %s791_s10 = smov (!%p191_p9), 17  }
   0xe   : > { %194 = sbr.rel (%p191_p9) target bundleno = 717 (0x2cd), region = 40  ;;  %s792_s11 = smov (!%p191_p9), 110  }
   0xf   : > { %s793_s12 = smov (!%p191_p9), 94   ;;  %s794_s13 = smov (!%p191_p9), 111  }
  0x10   : > { %s795_s14 = smov (!%p191_p9), 96   ;;  %s796_s15 = smov (!%p191_p9), 112  }
  0x11   : > { %s797_s16 = smov (!%p191_p9), 126   ;;  %s798_s17 = smov (!%p191_p9), 95  }
  0x12   : > { %s801_s23 = smov (!%p191_p9), 127  }
  0x13   : > { %s219_s30 = scalar_select %p218_p10, %s854_s22, 1  ;;  %vm230_vm0 = vcmask 138240   ;;  %v799_v9 = vmov 0.0   ;;  %v800_v11 = vmov 0   ;;  %v403_v12 = vld [vmem:[%s1015_s2] sm:$0xf]  ;;  %v237_v13 = vlaneseq }
  0x14   : > { %483 = vmatprep.mubr.f32.mxu0 %v799_v9  ;;  %573 = vmatprep.mubr.f32.mxu1 %v799_v9  ;;  %vm338_vm1 = vcmask 769024   ;;  %vm393_vm4 = vcmask 1043456   ;;  %vm312_vm5 = vcmask 900096   ;;  %vm325_vm6 = vcmask 785408  }
  0x15   : > { %s674_s6 = sshll.u32 %s219_s30, 3  ;;  %726 = vset.pattern.permute.xlu0 %v800_v11  ;;  %727 = vset.pattern.permute.xlu1 %v800_v11  ;;  %v238_v16 = vand.u32 127, %v237_v13  ;;  %vm299_vm7 = vcmask 916480   ;;  %vm286_vm8 = vcmask 1031168   ;;  %vm371_vm11 = vcmask 908288   ;;  %s802_s30 = smov [#allocation2]  }
  0x16   : > { %s222_s9 = scalar_lea.vmem %s1013_s0, %s674_s6  ;;  %vm388_vm12 = vcmask 777216   ;;  %vm354_vm13 = vcmask 1039360   ;;  %vm409_vm14 = vcmask 293888   ;;  %vm499_vm15 = vcmask 31744  }
  0x17   : > { %v223_v0 = vld [vmem:[%s222_s9] sm:$0xff]  ;;  %v239_v19 = vadd.s32 128, %v238_v16  ;;  %v244_v23 = vand.u32 15, %v238_v16 }
  0x18   : > { %226 = vrot.lane.b32.xlu0 %v223_v0, %s791_s10  ;;  %v225_v1 = vcombine.high %v223_v0, %v223_v0 }
  0x19   : > { %v251_v22 = vand.u32 15, %v239_v19  ;;  %vm914_vm3 = vcmp.ne.s32.totalorder %v244_v23, 15  ;;  %vm926_vm9 = vcmp.ne.s32.totalorder %v244_v23, 0  ;;  %v402_v23 = vld [vmem:[%s1014_s1] sm:$0xf] }
  0x1b   : > { %vm910_vm2 = vcmp.ne.s32.totalorder %v251_v22, 15  ;;  %vm930_vm10 = vcmp.ne.s32.totalorder %v251_v22, 0 }
  0x1c   : > { %228 = vrot.lane.b32.xlu0 %v225_v1, %s791_s10 }
  0x8a   : > { %v227_v2 = vpop.permute.xlu0 %226 }
  0x8b   : > { %v887_v3 = vsel %vm230_vm0, 0.0, %v227_v2 }
  0x8c   : > { %306 = vrot.lane.b32.xlu1 %v887_v3, %s792_s11  ;;  %332 = vrot.lane.b32.xlu0 %v887_v3, %s793_s12  ;;  %v345_v7 = vrot.slane %v887_v3, 4  ;;  %v272_v22 = vsel %vm926_vm9, %v887_v3, 0.0 }
  0x8e   : > { %v229_v4 = vpop.permute.xlu0 %228 }
  0x8f   : > { %v894_v5 = vsel %vm230_vm0, %v227_v2, %v229_v4  ;;  %v236_v6 = vsel %vm230_vm0, %v229_v4, 0.0 }
  0x90   : > { %365 = vrot.lane.b32.xlu1 %v887_v3, %s794_s13  ;;  %319 = vrot.lane.b32.xlu0 %v887_v3, %s795_s14  ;;  %v347_v8 = vrot.slane %v236_v6, 4  ;;  %v346_v10 = vrot.slane %v894_v5, 4 }
  0x94   : > { %293 = vrot.lane.b32.xlu0 %v887_v3, %s796_s15  ;;  %334 = vrot.lane.b32.xlu1 %v894_v5, %s793_s12 }
  0x98   : > { %308 = vrot.lane.b32.xlu0 %v894_v5, %s792_s11  ;;  %336 = vrot.lane.b32.xlu1 %v236_v6, %s793_s12 }
  0x9c   : > { %321 = vrot.lane.b32.xlu0 %v894_v5, %s795_s14  ;;  %310 = vrot.lane.b32.xlu1 %v236_v6, %s792_s11  ;;  %s215_s11 = sand.u32 1, %s781_s19  }
  0x9d   : > { %s660_s12 = sshll.u32 %s215_s11, 4  ;;  %s583_s25 = scalar_lea.sflag [#allocation3], %s215_s11 }
  0xa0   : > { %297 = vrot.lane.b32.xlu0 %v236_v6, %s796_s15  ;;  %323 = vrot.lane.b32.xlu1 %v236_v6, %s795_s14  ;;  %s217_s14 = scalar_lea.vmem [#allocation2], %s660_s12 }
  0xa4   : > { %369 = vrot.lane.b32.xlu0 %v236_v6, %s794_s13  ;;  %295 = vrot.lane.b32.xlu1 %v894_v5, %s796_s15  ;;  %s597_s15 = sshll.u32 %s217_s14, 4  ;;  %s598_s15 = int_to_ptr.vmem [resolvable:$true] %s597_s15 }
  0xa5   : > { %s729_s26 = scalar_lea.vmem %s598_s15, 256 }
  0xa6   : > { %p730_p11 = scmp.ne.s32.totalorder %s598_s15, %s729_s26 }
  0xa8   : > { %284 = vrot.lane.b32.xlu0 %v236_v6, %s797_s16  ;;  %382 = vrot.lane.b32.xlu1 %v345_v7, %s798_s17  ;;  %p731_p12 = pnand %p730_p11, %p871_p5 }
  0xaa   : > { %p732_p13 = pneg %p731_p12 }
  0xac   : > { %386 = vrot.lane.b32.xlu0 %v347_v8, %s798_s17  ;;  %367 = vrot.lane.b32.xlu1 %v894_v5, %s794_s13  ;;  %s675_s13 = sshll.u32 %s854_s22, 8  ;;  %s733_s22 = sshll.u32 %s802_s30, 4  ;;  %s734_s22 = int_to_ptr.vmem [resolvable:$false] %s733_s22 }
  0xad   : > { %s735_s6 = scalar_lea.vmem %s734_s22, 512  ;;  %p736_p0 = scmp.lt.s32.totalorder %s598_s15, %s734_s22 }
  0xae   : > { %p737_p1 = scmp.lt.s32.totalorder %s735_s6, %s729_s26 }
  0xb0   : > { %280 = vrot.lane.b32.xlu0 %v887_v3, %s797_s16  ;;  %282 = vrot.lane.b32.xlu1 %v894_v5, %s797_s16  ;;  %p738_p2 = por %p737_p1, %p736_p0 }
  0xb2   : > { %p739_p3 = pnand %p738_p2, %p732_p13 }
  0xb4   : > { %352 = vrot.lane.b32.xlu0 %v347_v8, %s801_s23  ;;  %384 = vrot.lane.b32.xlu1 %v346_v10, %s798_s17 }
  0xb8   : > { %350 = vrot.lane.b32.xlu1 %v346_v10, %s801_s23  ;;  %406 = vperm.xlu0 %726, %v403_v12  }
  0xbc   : > { %348 = vrot.lane.b32.xlu1 %v345_v7, %s801_s23  ;;  %s595_s23 = scalar_lea.hbm %s1018_s5, %s675_s13 }
  0xfe   : > { %v307_v14 = vpop.permute.xlu1 %306  ;;  %v333_v15 = vpop.permute.xlu0 %332 }
 0x102   : > { %v366_v17 = vpop.permute.xlu1 %365  ;;  %v320_v18 = vpop.permute.xlu0 %319 }
 0x106   : > { %v335_v20 = vpop.permute.xlu1 %334  ;;  %v294_v21 = vpop.permute.xlu0 %293 }
 0x107   : > { %v339_v25 = vsel %vm338_vm1, %v333_v15, %v335_v20 }
 0x108   : > { %v343_v31 = vsel %vm914_vm3, %v339_v25, 0.0 }
 0x10a   : > { %v337_v26 = vpop.permute.xlu1 %336  ;;  %v309_v28 = vpop.permute.xlu0 %308 }
 0x10b   : > { %v340_v29 = vsel %vm338_vm1, %v335_v20, %v337_v26  ;;  %v313_v43 = vsel %vm312_vm5, %v307_v14, %v309_v28 }
 0x10c   : > { %v344_v30 = vsel %vm910_vm2, %v340_v29, 0.0  ;;  %v317_v52 = vsel %vm914_vm3, %v313_v43, 0.0 }
 0x10d   : > { %663 = vmatprep.subr.msk.mxu0 %vm393_vm4, %v344_v30  ;;  %v378_v6 = vrot.slane %v317_v52, 4 }
 0x10e   : > { %v311_v32 = vpop.permute.xlu1 %310  ;;  %664 = vmatpush1.msk.msra.mxu0 %vm393_vm4, %v343_v31  ;;  %v322_v33 = vpop.permute.xlu0 %321  ;;  %v492_v31 = vld [vmem:[%s1016_s3] sm:$0xff] }
 0x10f   : > { %v314_v42 = vsel %vm312_vm5, %v309_v28, %v311_v32  ;;  %v326_v44 = vsel %vm325_vm6, %v320_v18, %v322_v33  ;;  %v273_v18 = vsel %vm930_vm10, %v894_v5, 0.0  ;;  %v493_v5 = vld [vmem:[%s1017_s4] sm:$0xff] }
 0x110   : > { %v318_v46 = vsel %vm910_vm2, %v314_v42, 0.0  ;;  %v330_v53 = vsel %vm926_vm9, %v326_v44, 0.0  ;;  %496 = vperm.xlu1 %727, %v493_v5  }
 0x111   : > { %v379_v55 = vrot.slane %v318_v46, 4 }
 0x112   : > { %v324_v34 = vpop.permute.xlu1 %323  ;;  %v298_v35 = vpop.permute.xlu0 %297 }
 0x113   : > { %v327_v47 = vsel %vm325_vm6, %v322_v33, %v324_v34 }
 0x114   : > { %v331_v56 = vsel %vm930_vm10, %v327_v47, 0.0 }
 0x116   : > { %v296_v36 = vpop.permute.xlu1 %295  ;;  %v370_v37 = vpop.permute.xlu0 %369 }
 0x117   : > { %v301_v48 = vsel %vm299_vm7, %v296_v36, %v298_v35  ;;  %v300_v54 = vsel %vm299_vm7, %v294_v21, %v296_v36 }
 0x118   : > { %v305_v57 = vsel %vm930_vm10, %v301_v48, 0.0  ;;  %v304_v0 = vsel %vm926_vm9, %v300_v54, 0.0 }
 0x119   : > { %v362_v8 = vrot.slane %v305_v57, 4  ;;  %v361_v13 = vrot.slane %v304_v0, 4 }
 0x11a   : > { %v383_v38 = vpop.permute.xlu1 %382  ;;  %v285_v39 = vpop.permute.xlu0 %284 }
 0x11e   : > { %v368_v40 = vpop.permute.xlu1 %367  ;;  %v387_v41 = vpop.permute.xlu0 %386 }
 0x11f   : > { %v373_v60 = vsel %vm371_vm11, %v368_v40, %v370_v37  ;;  %v372_v1 = vsel %vm371_vm11, %v366_v17, %v368_v40 }
 0x120   : > { %v399_v12 = vsel %vm393_vm4, %v373_v60, %v379_v55  ;;  %v398_v15 = vsel %vm393_vm4, %v372_v1, %v378_v6 }
 0x122   : > { %v283_v45 = vpop.permute.xlu1 %282  ;;  %v281_v51 = vpop.permute.xlu0 %280 }
 0x123   : > { %v288_v58 = vsel %vm286_vm8, %v283_v45, %v285_v39  ;;  %v287_v61 = vsel %vm286_vm8, %v281_v51, %v283_v45 }
 0x124   : > { %v292_v7 = vsel %vm910_vm2, %v288_v58, 0.0  ;;  %v291_v9 = vsel %vm914_vm3, %v287_v61, 0.0 }
 0x125   : > { %v397_v16 = vsel %vm393_vm4, %v292_v7, %v362_v8  ;;  %v396_v17 = vsel %vm393_vm4, %v291_v9, %v361_v13 }
 0x126   : > { %v385_v59 = vpop.permute.xlu1 %384  ;;  %v353_v10 = vpop.permute.xlu0 %352 }
 0x127   : > { %v389_v62 = vsel %vm388_vm12, %v383_v38, %v385_v59  ;;  %v390_v63 = vsel %vm388_vm12, %v385_v59, %v387_v41 }
 0x128   : > { %v401_v2 = vsel %vm393_vm4, %v331_v56, %v390_v63  ;;  %v400_v4 = vsel %vm393_vm4, %v330_v53, %v389_v62 }
 0x129   : > { %443 = vmatprep.subr.mxu0 %v401_v2 }
 0x12a   : > { %v351_v11 = vpop.permute.xlu1 %350  ;;  %444 = vmatpush1.msra.mxu0 %v400_v4 }
 0x12b   : > { %v356_v14 = vsel %vm354_vm13, %v351_v11, %v353_v10  ;;  %445 = vmatprep.subr.mxu0 %v399_v12 }
 0x12c   : > { %446 = vmatpush1.msra.mxu0 %v398_v15  ;;  %v395_v20 = vsel %vm393_vm4, %v273_v18, %v356_v14 }
 0x12d   : > { %447 = vmatprep.subr.mxu0 %v397_v16 }
 0x12e   : > { %v349_v19 = vpop.permute.xlu1 %348  ;;  %448 = vmatpush1.msra.mxu0 %v396_v17 }
 0x12f   : > { %v355_v21 = vsel %vm354_vm13, %v349_v19, %v351_v11  ;;  %449 = vmatprep.subr.mxu0 %v395_v20 }
 0x130   : > { %v394_v24 = vsel %vm393_vm4, %v272_v22, %v355_v21 }
 0x131   : > { %450 = vmatpush1.msra.mxu0 %v394_v24 }
 0x132   : > { %665 = vmatmul.mubr.msk.f32.vlgmr.msra.gmra.mxu0 %vm409_vm14, %v402_v23 }
 0x133   : > { %v407_v25 = vpop.permute.xlu0 %406 }
 0x18b   : > { %v497_v32 = vpop.permute.xlu1 %496 }
 0x1f2   : > { %v485_v26 = vpop.f32.mrf.mxu0 }
 0x1f3   : > { %v486_v27 = vadd.f32 %v485_v26, %v407_v25 }
 0x1f4   : > { %v487_v3 = vpop.f32.mrf.mxu0 }
 0x1f5   : > { %v488_v28 = vadd.f32 %v487_v3, %v407_v25  ;;  %v490_v30 = vmax.f32 %v486_v27, 0.0 }
 0x1f7   : > { %v491_v29 = vmax.f32 %v488_v28, 0.0 }
 0x1f9   : > { %666 = vmatprep.subr.msk.mxu1 %vm393_vm4, %v491_v29 }
 0x1fa   : > { %667 = vmatpush1.msk.msra.mxu1 %vm393_vm4, %v490_v30 }
 0x1fb   : > { %668 = vmatmul.mubr.msk.f32.vlgmr.msra.gmra.mxu1 %vm499_vm15, %v492_v31 }
 0x2bb   : > { %v575_v33 = vpop.f32.mrf.mxu1 }
 0x2bc   : > { %v576_v34 = vadd.f32 %v575_v33, %v497_v32 }
 0x2bd   : > { %v577_v35 = vpop.f32.mrf.mxu1 }
 0x2be   : > { %580 = vst [vmem:[%s217_s14] sm:$0xff] %v576_v34  ;;  %v578_v36 = vadd.f32 %v577_v35, %v497_v32 }
 0x2c0   : > { %581 = vst [vmem:[%s217_s14 + $0x8] sm:$0xff] %v578_v36 }
 0x2c1   : > { %742 = shalt.err (!%p739_p3)
}
 0x2c2   : > { %s743_s7 = scalar_lea.hbm %s595_s23, 256  ;;  %s747_s10 = scalar_lea.hbm %s1018_s5, 512 }
 0x2c3   : > { %p744_p4 = scmp.ne.s32.totalorder %s595_s23, %s743_s7  ;;  %p748_p9 = scmp.lt.s32.totalorder %s595_s23, %s1018_s5 }
 0x2c4   : > { %p749_p10 = scmp.lt.s32.totalorder %s747_s10, %s743_s7 }
 0x2c5   : > { %p745_p7 = pnand %p744_p4, %p871_p5 }
 0x2c6   : > { %p750_p11 = por %p749_p10, %p748_p9 }
 0x2c7   : > { %p746_p8 = pneg %p745_p7 }
 0x2c9   : > { %p751_p12 = pnand %p750_p11, %p746_p8 }
 0x2cb   : > { %754 = shalt.err (!%p751_p12)
}
 0x2cc   : > { %676 = dma.vmem_to_hbm [thread:$0]  (%p871_p5), %s598_s15, 256, %s595_s23, %s583_s25  }
 0x2cd PF: > { %p682_p13 = scmp.ge.s32.totalorder %s789_s21, 2  ;;  %s609_s13 = sand.u32 1, %s777_s18  }
 0x2ce   : > { %s610_s14 = scalar_lea.sflag [#allocation3], %s609_s13 }
 0x2cf   : > { %p679_p0 = pnand %p682_p13, %p875_p6 }
 0x2d1   : > { %p680_p1 = pneg %p679_p0 }
 0x2d3   : > { %772 = dma.done.wait (%p680_p1), %s610_s14, 256  }
 0x2d4   : > { %774 = vsyncadd (%p680_p1), %s610_s14, 4294967040  ;;  %p15_p2 = scmp.ge.s32.totalorder %s858_s24, 4   ;;  %s1029_s18 = smov %s781_s19 }
 0x2d5   : > { %s1030_s19 = smov %s785_s20  ;;  %s1031_s20 = smov %s869_s27 }
 0x2d6   : > { %s1032_s21 = smov %s858_s24  ;;  %17 = sbr.rel (!%p15_p2) target bundleno = 3 (0x3), region = 75 }
 0x2db   :  { %615 = vsyncpa [#allocation3], 1 }
 0x2dc   :  { %617 = vsyncpa [#allocation3 + $0x1], 1 }

</bundles_post_ra>
